<compile_context>
chip_gen: v7x
topology: tpu7x:2x2x1
jax: 0.10.0
libtpu: 0.0.40
codegen_flags: <defaults>
</compile_context>

<pallas_src>
import math
import jax
import jax.numpy as jnp
from jax.experimental import pallas as pl
from jax.experimental.pallas import tpu as pltpu

_INV_SQRT2 = 1.0 / math.sqrt(2.0)


def _mlp_kernel(x_ref, w1_ref, b1_ref, w2_ref, b2_ref, o_ref, acc_ref):
    """One (row-tile, hidden-tile) grid step of y = fc2(GELU(fc1(x)))."""
    h_idx = pl.program_id(1)

    @pl.when(h_idx == 0)
    def _init():
        acc_ref[...] = jnp.zeros_like(acc_ref)

    # fc1 partial: (tm, D) @ (D, th) on the MXU, f32 accumulation.
    h = jnp.dot(x_ref[...], w1_ref[...], preferred_element_type=jnp.float32)
    h = h + b1_ref[...]  # bias in f32

    # Exact (erf) GELU -> matches torch.nn.GELU() default.
    # TODO(synk): switch to tanh-approximate GELU (EUP slot, ~free next to the
    # MXU) if the model tolerates it; erf is a VALU polynomial over (tm, th).
    h = 0.5 * h * (1.0 + jax.lax.erf(h * _INV_SQRT2))

    # fc2 partial: (tm, th) @ (th, Dout), accumulate into f32 scratch.
    acc_ref[...] += jnp.dot(h.astype(w2_ref.dtype), w2_ref[...],
                            preferred_element_type=jnp.float32)

    @pl.when(h_idx == pl.num_programs(1) - 1)
    def _finalize():
        o_ref[...] = (acc_ref[...] + b2_ref[...]).astype(o_ref.dtype)


def _round_up(a, b):
    return -(-a // b) * b


def mlp_pallas(x, w1, b1, w2, b2, *, tile_m=256, tile_h=512,
               compute_dtype=jnp.bfloat16, out_dtype=None,
               vmem_limit_bytes=64 * 1024 * 1024):
    """x: (B, N, D);  w1: (D, H), b1: (H,);  w2: (H, Dout), b2: (Dout,)."""
    B, N, D = x.shape
    H = w1.shape[1]
    Dout = w2.shape[1]
    M = B * N
    out_dtype = out_dtype or x.dtype

    # Lane-dense padding (multiples of 128 on feature axes), row padding to the
    # chosen row tile. Zero padding is exact: padded hidden columns see
    # GELU(0 + 0) = 0 and multiply zero rows of w2; padded rows are trimmed.
    Dp = _round_up(D, 128)
    Doutp = _round_up(Dout, 128)
    tile_h = min(tile_h, _round_up(H, 128))
    Hp = _round_up(H, tile_h)
    tile_m = min(tile_m, _round_up(M, 8))
    Mp = _round_up(M, tile_m)

    x2 = jnp.pad(x.reshape(M, D), ((0, Mp - M), (0, Dp - D))).astype(compute_dtype)
    w1p = jnp.pad(w1, ((0, Dp - D), (0, Hp - H))).astype(compute_dtype)
    w2p = jnp.pad(w2, ((0, Hp - H), (0, Doutp - Dout))).astype(compute_dtype)
    b1p = jnp.pad(b1, (0, Hp - H)).astype(jnp.float32).reshape(1, Hp)
    b2p = jnp.pad(b2, (0, Doutp - Dout)).astype(jnp.float32).reshape(1, Doutp)

    grid = (Mp // tile_m, Hp // tile_h)

    cost = pl.CostEstimate(
        flops=2 * M * (D * H + H * Dout),
        transcendentals=M * H,
        bytes_accessed=(x2.size * x2.dtype.itemsize
                        + w1p.size * w1p.dtype.itemsize
                        + w2p.size * w2p.dtype.itemsize
                        + b1p.size * 4 + b2p.size * 4
                        + Mp * Doutp * jnp.dtype(out_dtype).itemsize))

    out = pl.pallas_call(
        _mlp_kernel,
        out_shape=jax.ShapeDtypeStruct((Mp, Doutp), out_dtype),
        grid_spec=pltpu.PrefetchScalarGridSpec(
            num_scalar_prefetch=0,
            grid=grid,
            in_specs=[
                pl.BlockSpec((tile_m, Dp),    lambda i, h: (i, 0)),  # x rows
                pl.BlockSpec((Dp, tile_h),    lambda i, h: (0, h)),  # w1 slab
                pl.BlockSpec((1, tile_h),     lambda i, h: (0, h)),  # b1 slab
                pl.BlockSpec((tile_h, Doutp), lambda i, h: (h, 0)),  # w2 slab
                pl.BlockSpec((1, Doutp),      lambda i, h: (0, 0)),  # b2
            ],
            out_specs=pl.BlockSpec((tile_m, Doutp), lambda i, h: (i, 0)),
            scratch_shapes=[pltpu.VMEM((tile_m, Doutp), jnp.float32)],
        ),
        compiler_params=pltpu.CompilerParams(
            dimension_semantics=("parallel", "arbitrary"),
            vmem_limit_bytes=vmem_limit_bytes),
        cost_estimate=cost,
    )(x2, w1p, b1p, w2p, b2p)

    return out[:M, :Dout].reshape(B, N, Dout)


def _reference(x, w1, b1, w2, b2):
    h = x @ w1 + b1
    h = 0.5 * h * (1.0 + jax.lax.erf(h * _INV_SQRT2))
    return h @ w2 + b2


if __name__ == "__main__":
    key = jax.random.PRNGKey(0)
    kx, k1, k2, k3, k4 = jax.random.split(key, 5)

    # --- Case 1: toy shapes matching Mlp(in_features=32, hidden_features=64) ---
    B, N, D, H = 2, 8, 32, 64
    Dout = D  # out_features defaults to in_features
    x = jax.random.normal(kx, (B, N, D), dtype=jnp.float32)
    w1 = jax.random.normal(k1, (D, H), dtype=jnp.float32) * (1.0 / math.sqrt(D))
    b1 = jax.random.normal(k2, (H,), dtype=jnp.float32) * 0.01
    w2 = jax.random.normal(k3, (H, Dout), dtype=jnp.float32) * (1.0 / math.sqrt(H))
    b2 = jax.random.normal(k4, (Dout,), dtype=jnp.float32) * 0.01

    y = jax.block_until_ready(mlp_pallas(x, w1, b1, w2, b2))
    y_ref = _reference(x.reshape(B * N, D), w1, b1, w2, b2).reshape(B, N, Dout)
    assert jnp.allclose(y, y_ref, atol=5e-2, rtol=5e-2), "case-1 mismatch"

    # --- Case 2: exercise the (M-tile, H-tile) accumulator grid (2x2 steps) ---
    k5, k6, k7, k8, k9 = jax.random.split(jax.random.PRNGKey(1), 5)
    B2, N2, D2, H2 = 2, 64, 128, 256
    D2out = D2
    xb = jax.random.normal(k5, (B2, N2, D2), dtype=jnp.float32)
    w1b = jax.random.normal(k6, (D2, H2), dtype=jnp.float32) * (1.0 / math.sqrt(D2))
    b1b = jax.random.normal(k7, (H2,), dtype=jnp.float32) * 0.01
    w2b = jax.random.normal(k8, (H2, D2out), dtype=jnp.float32) * (1.0 / math.sqrt(H2))
    b2b = jax.random.normal(k9, (D2out,), dtype=jnp.float32) * 0.01

    y2 = jax.block_until_ready(
        mlp_pallas(xb, w1b, b1b, w2b, b2b, tile_m=64, tile_h=128))
    y2_ref = _reference(xb.reshape(B2 * N2, D2), w1b, b1b, w2b, b2b
                        ).reshape(B2, N2, D2out)
    assert jnp.allclose(y2, y2_ref, atol=8e-2, rtol=5e-2), "case-2 mismatch"

    print("KERNEL_OK")
</pallas_src>

<mosaic_0001>
module attributes {stable_mosaic.version = 11 : i64} {
  func.func @_mlp_kernel(%arg0: i32, %arg1: i32, %arg2: memref<16x128xbf16, #tpu.memory_space<vmem>>, %arg3: memref<128x128xbf16, #tpu.memory_space<vmem>>, %arg4: memref<1x128xf32, #tpu.memory_space<vmem>>, %arg5: memref<128x128xbf16, #tpu.memory_space<vmem>>, %arg6: memref<1x128xf32, #tpu.memory_space<vmem>>, %arg7: memref<16x128xf32, #tpu.memory_space<vmem>>, %arg8: memref<16x128xf32, #tpu.memory_space<vmem>>) attributes {dimension_semantics = [#tpu.dimension_semantics<parallel>, #tpu.dimension_semantics<arbitrary>], iteration_bounds = array<i64: 1, 1>, scalar_prefetch = 0 : i64, scratch_operands = 1 : i64, tpu.core_type = #tpu.core_type<tc>, window_params = [{transform_indices = @transform_0, window_bounds = array<i64: 16, 128>}, {transform_indices = @transform_1, window_bounds = array<i64: 128, 128>}, {transform_indices = @transform_2, window_bounds = array<i64: 1, 128>}, {transform_indices = @transform_3, window_bounds = array<i64: 128, 128>}, {pipeline_mode = #tpu.pipeline_mode<synchronous>, transform_indices = @transform_4, window_bounds = array<i64: 1, 128>}, {transform_indices = @transform_5, window_bounds = array<i64: 16, 128>}]} {
    %c0_i32 = arith.constant 0 : i32
    %0 = arith.cmpi eq, %arg1, %c0_i32 : i32
    %1 = arith.extui %0 : i1 to i32
    %c0_i32_0 = arith.constant 0 : i32
    %2 = arith.cmpi ne, %1, %c0_i32_0 : i32
    scf.if %2 {
      %cst_18 = arith.constant 0.000000e+00 : f32
      %26 = vector.broadcast %cst_18 : f32 to vector<16x128xf32>
      %c0_19 = arith.constant 0 : index
      %c0_20 = arith.constant 0 : index
      %27 = vector.load %arg8[%c0_19, %c0_20] : memref<16x128xf32, #tpu.memory_space<vmem>>, vector<16x128xf32>
      tpu.vector_store %arg8[%c0_19, %c0_20], %26 {strides = array<i32>} : memref<16x128xf32, #tpu.memory_space<vmem>>, vector<16x128xf32>,
    } else {
    }
    %c0 = arith.constant 0 : index
    %c0_1 = arith.constant 0 : index
    %3 = vector.load %arg2[%c0, %c0_1] : memref<16x128xbf16, #tpu.memory_space<vmem>>, vector<16x128xbf16>
    %c0_2 = arith.constant 0 : index
    %c0_3 = arith.constant 0 : index
    %4 = vector.load %arg3[%c0_2, %c0_3] : memref<128x128xbf16, #tpu.memory_space<vmem>>, vector<128x128xbf16>
    %cst = arith.constant dense<0.000000e+00> : vector<16x128xf32>
    %5 = tpu.matmul %3, %4, %cst {dimension_numbers = #tpu.dot_dimension_numbers<[1], [0], [0], [1], [0, 0, 1, 1], [], []>} : vector<16x128xbf16>, vector<128x128xbf16>, vector<16x128xf32> -> vector<16x128xf32>
    %c0_4 = arith.constant 0 : index
    %c0_5 = arith.constant 0 : index
    %6 = vector.load %arg4[%c0_4, %c0_5] : memref<1x128xf32, #tpu.memory_space<vmem>>, vector<1x128xf32>
    %7 = vector.broadcast %6 : vector<1x128xf32> to vector<16x128xf32>
    %8 = arith.addf %5, %7 : vector<16x128xf32>
    %cst_6 = arith.constant 5.000000e-01 : f32
    %9 = vector.broadcast %cst_6 : f32 to vector<16x128xf32>
    %10 = arith.mulf %9, %8 : vector<16x128xf32>
    %cst_7 = arith.constant 0.707106769 : f32
    %11 = vector.broadcast %cst_7 : f32 to vector<16x128xf32>
    %12 = arith.mulf %8, %11 : vector<16x128xf32>
    %13 = math.erf %12 : vector<16x128xf32>
    %cst_8 = arith.constant 1.000000e+00 : f32
    %14 = vector.broadcast %cst_8 : f32 to vector<16x128xf32>
    %15 = arith.addf %14, %13 : vector<16x128xf32>
    %16 = arith.mulf %10, %15 : vector<16x128xf32>
    %c0_9 = arith.constant 0 : index
    %c0_10 = arith.constant 0 : index
    %17 = vector.load %arg8[%c0_9, %c0_10] : memref<16x128xf32, #tpu.memory_space<vmem>>, vector<16x128xf32>
    %18 = arith.truncf %16 : vector<16x128xf32> to vector<16x128xbf16>
    %c0_11 = arith.constant 0 : index
    %c0_12 = arith.constant 0 : index
    %19 = vector.load %arg5[%c0_11, %c0_12] : memref<128x128xbf16, #tpu.memory_space<vmem>>, vector<128x128xbf16>
    %cst_13 = arith.constant dense<0.000000e+00> : vector<16x128xf32>
    %20 = tpu.matmul %18, %19, %cst_13 {dimension_numbers = #tpu.dot_dimension_numbers<[1], [0], [0], [1], [0, 0, 1, 1], [], []>} : vector<16x128xbf16>, vector<128x128xbf16>, vector<16x128xf32> -> vector<16x128xf32>
    %21 = arith.addf %17, %20 : vector<16x128xf32>
    %c0_14 = arith.constant 0 : index
    %c0_15 = arith.constant 0 : index
    %22 = vector.load %arg8[%c0_14, %c0_15] : memref<16x128xf32, #tpu.memory_space<vmem>>, vector<16x128xf32>
    tpu.vector_store %arg8[%c0_14, %c0_15], %21 {strides = array<i32>} : memref<16x128xf32, #tpu.memory_space<vmem>>, vector<16x128xf32>,
    %c0_i32_16 = arith.constant 0 : i32
    %23 = arith.cmpi eq, %arg1, %c0_i32_16 : i32
    %24 = arith.extui %23 : i1 to i32
    %c0_i32_17 = arith.constant 0 : i32
    %25 = arith.cmpi ne, %24, %c0_i32_17 : i32
    scf.if %25 {
      %c0_18 = arith.constant 0 : index
      %c0_19 = arith.constant 0 : index
      %26 = vector.load %arg8[%c0_18, %c0_19] : memref<16x128xf32, #tpu.memory_space<vmem>>, vector<16x128xf32>
      %c0_20 = arith.constant 0 : index
      %c0_21 = arith.constant 0 : index
      %27 = vector.load %arg6[%c0_20, %c0_21] : memref<1x128xf32, #tpu.memory_space<vmem>>, vector<1x128xf32>
      %28 = vector.broadcast %27 : vector<1x128xf32> to vector<16x128xf32>
      %29 = arith.addf %26, %28 : vector<16x128xf32>
      %c0_22 = arith.constant 0 : index
      %c0_23 = arith.constant 0 : index
      %30 = vector.load %arg7[%c0_22, %c0_23] : memref<16x128xf32, #tpu.memory_space<vmem>>, vector<16x128xf32>
      tpu.vector_store %arg7[%c0_22, %c0_23], %29 {strides = array<i32>} : memref<16x128xf32, #tpu.memory_space<vmem>>, vector<16x128xf32>,
    } else {
    }
    return
  }
  func.func @transform_0(%arg0: i32, %arg1: i32) -> (i32, i32) {
    %c0_i32 = arith.constant 0 : i32
    %c0_i32_0 = arith.constant 0 : i32
    return %arg0, %c0_i32 : i32, i32
  }
  func.func @transform_1(%arg0: i32, %arg1: i32) -> (i32, i32) {
    %c0_i32 = arith.constant 0 : i32
    %c0_i32_0 = arith.constant 0 : i32
    return %c0_i32, %arg1 : i32, i32
  }
  func.func @transform_2(%arg0: i32, %arg1: i32) -> (i32, i32) {
    %c0_i32 = arith.constant 0 : i32
    %c0_i32_0 = arith.constant 0 : i32
    return %c0_i32, %arg1 : i32, i32
  }
  func.func @transform_3(%arg0: i32, %arg1: i32) -> (i32, i32) {
    %c0_i32 = arith.constant 0 : i32
    %c0_i32_0 = arith.constant 0 : i32
    return %arg1, %c0_i32 : i32, i32
  }
  func.func @transform_4(%arg0: i32, %arg1: i32) -> (i32, i32) {
    %c0_i32 = arith.constant 0 : i32
    %c0_i32_0 = arith.constant 0 : i32
    %c0_i32_1 = arith.constant 0 : i32
    return %c0_i32, %c0_i32_0 : i32, i32
  }
  func.func @transform_5(%arg0: i32, %arg1: i32) -> (i32, i32) {
    %c0_i32 = arith.constant 0 : i32
    %c0_i32_0 = arith.constant 0 : i32
    return %arg0, %c0_i32 : i32, i32
  }
}

</mosaic_0001>

<bundles_post_ra>
// kernel: tpu_custom_call.1
= control target key start
LH: loop header
LB: loop body
LE: loop exit
PB: predicated region body
PF: predicated region fallthrough
CT: control target
= control target key end

     0   :  { %10 = vsyncpa [#allocation4], 0  ;;  %s749_s0 = inlined_call_operand.hbm [shape: bf16[16,128], index: 0, kind: input, shape index: {}]   ;;  %s750_s1 = inlined_call_operand.hbm [shape: bf16[128,128], index: 1, kind: input, shape index: {}]   ;;  %s751_s2 = inlined_call_operand.hbm [shape: f32[1,128], index: 2, kind: input, shape index: {}]   ;;  %s752_s3 = inlined_call_operand.hbm [shape: bf16[128,128], index: 3, kind: input, shape index: {}]   ;;  %s753_s4 = inlined_call_operand.hbm [shape: f32[1,128], index: 4, kind: input, shape index: {}]   ;;  %s754_s5 = inlined_call_operand.hbm [shape: f32[16,128], index: 5, kind: output, shape index: {}]  }
   0x1   :  { %11 = vsyncpa [#allocation7], 0 }
   0x2   :  { %12 = vsyncpa [#allocation10], 0 }
   0x3   :  { %13 = vsyncpa [#allocation5], 0  ;;  %s619_s18 = smov [#allocation6]   ;;  %s620_s20 = smov [#allocation9]  }
   0x4   :  { %s31_s19 = sshll.u32 %s619_s18, 4  ;;  %s53_s21 = sshll.u32 %s620_s20, 4  ;;  %s32_s19 = int_to_ptr.vmem [resolvable:$true] %s31_s19  ;;  %s661_s21 = int_to_ptr.vmem [resolvable:$true] %s53_s21 }
   0x5   :  { %s479_s24 = scalar_lea.hbm %s750_s1, 1024 }
   0x6   :  { %p480_p0 = scmp.ne.s32.totalorder %s750_s1, %s479_s24  ;;  %p483_p1 = scmp.lt.u32.totalorder %s479_s24, %s750_s1 }
   0x8   :  { %p485_p2 = pnand %p483_p1, %p480_p0 }
   0xa   :  { %488 = shalt.err (!%p485_p2)
}
   0xb   :  { %s489_s29 = scalar_lea.vmem %s32_s19, 1024  ;;  %p494_p4 = scmp.lt.s32.totalorder %s32_s19, %s32_s19 }
   0xc   :  { %p490_p3 = scmp.ne.s32.totalorder %s32_s19, %s489_s29  ;;  %p495_p5 = scmp.lt.s32.totalorder %s489_s29, %s489_s29 }
   0xe   :  { %p496_p6 = por %p495_p5, %p494_p4 }
  0x10   :  { %p497_p7 = pnand %p496_p6, %p490_p3 }
  0x12   :  { %500 = shalt.err (!%p497_p7)
}
  0x13   :  { %s621_s30 = smov 64   ;;  %s622_s6 = smov 4  }
  0x14   :  { %37 = dma.hbm_to_vmem [thread:$0]  %s750_s1, 1024, %s32_s19, [#allocation7], %s621_s30, %s621_s30, %s622_s6  }
  0x15   :  { %s501_s11 = scalar_lea.hbm %s752_s3, 1024 }
  0x16   :  { %p502_p8 = scmp.ne.s32.totalorder %s752_s3, %s501_s11  ;;  %p505_p9 = scmp.lt.u32.totalorder %s501_s11, %s752_s3 }
  0x18   :  { %p507_p10 = pnand %p505_p9, %p502_p8 }
  0x1a   :  { %510 = shalt.err (!%p507_p10)
}
  0x1b   :  { %s511_s16 = scalar_lea.vmem %s661_s21, 1024  ;;  %p516_p12 = scmp.lt.s32.totalorder %s661_s21, %s661_s21 }
  0x1c   :  { %p512_p11 = scmp.ne.s32.totalorder %s661_s21, %s511_s16  ;;  %p517_p13 = scmp.lt.s32.totalorder %s511_s16, %s511_s16 }
  0x1e   :  { %p518_p0 = por %p517_p13, %p516_p12 }
  0x20   :  { %p519_p1 = pnand %p518_p0, %p512_p11 }
  0x22   :  { %522 = shalt.err (!%p519_p1)
}
  0x23   :  { %59 = dma.hbm_to_vmem [thread:$0]  %s752_s3, 1024, %s661_s21, [#allocation10], %s621_s30, %s621_s30, %s622_s6  }
  0x24   :  { %s623_s18 = smov [#allocation3]   ;;  %s624_s20 = smov [#allocation8]  }
  0x25   :  { %s19_s19 = sshll.u32 %s623_s18, 4  ;;  %s44_s22 = sshll.u32 %s624_s20, 4  ;;  %s20_s19 = int_to_ptr.vmem [resolvable:$true] %s19_s19  ;;  %s45_s22 = int_to_ptr.vmem [resolvable:$true] %s44_s22 }
  0x26   :  { %s523_s25 = scalar_lea.hbm %s749_s0, 128 }
  0x27   :  { %p524_p2 = scmp.ne.s32.totalorder %s749_s0, %s523_s25  ;;  %p527_p3 = scmp.lt.u32.totalorder %s523_s25, %s749_s0 }
  0x29   :  { %p529_p4 = pnand %p527_p3, %p524_p2 }
  0x2b   :  { %532 = shalt.err (!%p529_p4)
}
  0x2c   :  { %s533_s3 = scalar_lea.vmem %s20_s19, 128  ;;  %p538_p6 = scmp.lt.s32.totalorder %s20_s19, %s20_s19 }
  0x2d   :  { %p534_p5 = scmp.ne.s32.totalorder %s20_s19, %s533_s3  ;;  %p539_p7 = scmp.lt.s32.totalorder %s533_s3, %s533_s3 }
  0x2f   :  { %p540_p8 = por %p539_p7, %p538_p6 }
  0x31   :  { %p541_p9 = pnand %p540_p8, %p534_p5 }
  0x33   :  { %544 = shalt.err (!%p541_p9)
}
  0x34   :  { %25 = dma.hbm_to_vmem [thread:$0]  %s749_s0, 128, %s20_s19, [#allocation4], %s621_s30, %s621_s30, %s622_s6  }
  0x35   :  { %s545_s10 = scalar_lea.hbm %s751_s2, 16 }
  0x36   :  { %p546_p10 = scmp.ne.s32.totalorder %s751_s2, %s545_s10  ;;  %p549_p11 = scmp.lt.u32.totalorder %s545_s10, %s751_s2 }
  0x38   :  { %p551_p12 = pnand %p549_p11, %p546_p10 }
  0x3a   :  { %554 = shalt.err (!%p551_p12)
}
  0x3b   :  { %s555_s15 = scalar_lea.vmem %s45_s22, 16  ;;  %s559_s16 = scalar_lea.vmem %s45_s22, 32 }
  0x3c   :  { %p556_p13 = scmp.ne.s32.totalorder %s45_s22, %s555_s15  ;;  %p560_p0 = scmp.lt.s32.totalorder %s45_s22, %s45_s22 }
  0x3d   :  { %p561_p1 = scmp.lt.s32.totalorder %s559_s16, %s555_s15 }
  0x3f   :  { %p562_p2 = por %p561_p1, %p560_p0 }
  0x41   :  { %p563_p3 = pnand %p562_p2, %p556_p13 }
  0x43   :  { %566 = shalt.err (!%p563_p3)
}
  0x44   :  { %47 = dma.hbm_to_vmem [thread:$0]  %s751_s2, 16, %s45_s22, [#allocation7]  }
  0x45   :  { %s625_s6 = smov [#allocation11]   ;;  %s567_s19 = scalar_lea.hbm %s753_s4, 16 }
  0x46   :  { %s66_s1 = sshll.u32 %s625_s6, 4  ;;  %p568_p4 = scmp.ne.s32.totalorder %s753_s4, %s567_s19  ;;  %s67_s1 = int_to_ptr.vmem [resolvable:$true] %s66_s1 }
  0x47   :  { %p571_p5 = scmp.lt.u32.totalorder %s567_s19, %s753_s4 }
  0x49   :  { %p573_p6 = pnand %p571_p5, %p568_p4 }
  0x4b   :  { %576 = shalt.err (!%p573_p6)
}
  0x4c   :  { %s577_s26 = scalar_lea.vmem %s67_s1, 16  ;;  %s581_s2 = scalar_lea.vmem %s67_s1, 32 }
  0x4d   :  { %p578_p7 = scmp.ne.s32.totalorder %s67_s1, %s577_s26  ;;  %p582_p8 = scmp.lt.s32.totalorder %s67_s1, %s67_s1 }
  0x4e   :  { %p583_p9 = scmp.lt.s32.totalorder %s581_s2, %s577_s26 }
  0x50   :  { %p584_p10 = por %p583_p9, %p582_p8 }
  0x52   :  { %p585_p11 = pnand %p584_p10, %p578_p7 }
  0x54   :  { %588 = shalt.err (!%p585_p11)
}
  0x55   :  { %69 = dma.hbm_to_vmem [thread:$0]  %s753_s4, 16, %s67_s1, [#allocation10]  }
  0x56   :  { %611 = dma.done.wait [#allocation4], 128  }
  0x57   :  { %612 = vsyncadd [#allocation4], 4294967168 }
  0x58   :  { %613 = dma.done.wait [#allocation7], 1040  }
  0x59   :  { %614 = vsyncadd [#allocation7], 4294966256 }
  0x5a   :  { %615 = dma.done.wait [#allocation10], 1040  }
  0x5b   :  { %616 = vsyncadd [#allocation10], 4294966256  ;;  %v626_v0 = vmov 0.0   ;;  %vm627_vm0 = vmmov 0   ;;  %v458_v1 = vld [vmem:[#allocation6] sm:$0xff]   ;;  %v459_v2 = vld [vmem:[#allocation6 + $0x8] sm:$0xff]  }
  0x5c   :  { %406 = vmatprep.subr.bf16.mxu0 %v626_v0  ;;  %422 = vmatprep.mubr.msk.bf16.mxu0 %vm627_vm0, %v626_v0  ;;  %v460_v3 = vld [vmem:[#allocation6 + $0x10] sm:$0xff]   ;;  %v467_v4 = vld [vmem:[#allocation9] sm:$0xff]   ;;  %v461_v5 = vld [vmem:[#allocation6 + $0x18] sm:$0xff]   ;;  %s628_s4 = smov [#allocation12]  }
  0x5d   :  { %426 = vmatprep.subr.bf16.mxu1 %v626_v0  ;;  %442 = vmatprep.mubr.msk.bf16.mxu1 %vm627_vm0, %v626_v0  ;;  %v468_v6 = vld [vmem:[#allocation9 + $0x8] sm:$0xff]   ;;  %v462_v7 = vld [vmem:[#allocation6 + $0x20] sm:$0xff]   ;;  %v465_v10 = vld [vmem:[#allocation6 + $0x38] sm:$0xff]   ;;  %s355_s28 = sshll.u32 %s628_s4, 4  ;;  %s356_s28 = int_to_ptr.vmem [resolvable:$true] %s355_s28 }
  0x5e   :  { %407 = vmatpush3.bf16.msra.mxu0 %v458_v1  ;;  %427 = vmatpush3.bf16.msra.mxu1 %v467_v4  ;;  %v463_v8 = vld [vmem:[#allocation6 + $0x28] sm:$0xff]   ;;  %v464_v9 = vld [vmem:[#allocation6 + $0x30] sm:$0xff]   ;;  %v466_v11 = vld [vmem:[#allocation3] sm:$0xff]   ;;  %s589_s29 = scalar_lea.vmem %s356_s28, 256  ;;  %p594_p13 = scmp.lt.s32.totalorder %s356_s28, %s356_s28 }
  0x5f   :  { %408 = vmatprep.subr.bf16.mxu0 %v626_v0  ;;  %428 = vmatprep.subr.bf16.mxu1 %v626_v0  ;;  %v469_v12 = vld [vmem:[#allocation9 + $0x10] sm:$0xff]   ;;  %v470_v13 = vld [vmem:[#allocation9 + $0x18] sm:$0xff]   ;;  %v471_v14 = vld [vmem:[#allocation9 + $0x20] sm:$0xff]   ;;  %p590_p12 = scmp.ne.s32.totalorder %s356_s28, %s589_s29  ;;  %p595_p0 = scmp.lt.s32.totalorder %s589_s29, %s589_s29 }
  0x60   :  { %v472_v15 = vld [vmem:[#allocation9 + $0x28] sm:$0xff]   ;;  %v473_v16 = vld [vmem:[#allocation9 + $0x30] sm:$0xff]   ;;  %v474_v17 = vld [vmem:[#allocation9 + $0x38] sm:$0xff]  }
  0x61   :  { %v369_v18 = vld [vmem:[#allocation8] ss:$0 sm:$0xff]  ;;  %v387_v36 = vld [vmem:[#allocation11] ss:$0 sm:$0xff]  ;;  %p596_p1 = por %p595_p0, %p594_p13 }
  0x62   :  { %409 = vmatpush3.bf16.msra.mxu0 %v459_v2  ;;  %429 = vmatpush3.bf16.msra.mxu1 %v468_v6 }
  0x63   :  { %410 = vmatprep.subr.bf16.mxu0 %v626_v0  ;;  %430 = vmatprep.subr.bf16.mxu1 %v626_v0  ;;  %p597_p2 = pnand %p596_p1, %p590_p12 }
  0x66   :  { %411 = vmatpush3.bf16.msra.mxu0 %v460_v3  ;;  %431 = vmatpush3.bf16.msra.mxu1 %v469_v12 }
  0x67   :  { %412 = vmatprep.subr.bf16.mxu0 %v626_v0  ;;  %432 = vmatprep.subr.bf16.mxu1 %v626_v0 }
  0x6a   :  { %413 = vmatpush3.bf16.msra.mxu0 %v461_v5  ;;  %433 = vmatpush3.bf16.msra.mxu1 %v470_v13 }
  0x6b   :  { %414 = vmatprep.subr.bf16.mxu0 %v626_v0  ;;  %434 = vmatprep.subr.bf16.mxu1 %v626_v0 }
  0x6e   :  { %415 = vmatpush3.bf16.msra.mxu0 %v462_v7  ;;  %435 = vmatpush3.bf16.msra.mxu1 %v471_v14 }
  0x6f   :  { %416 = vmatprep.subr.bf16.mxu0 %v626_v0  ;;  %436 = vmatprep.subr.bf16.mxu1 %v626_v0 }
  0x72   :  { %417 = vmatpush3.bf16.msra.mxu0 %v463_v8  ;;  %437 = vmatpush3.bf16.msra.mxu1 %v472_v15 }
  0x73   :  { %418 = vmatprep.subr.bf16.mxu0 %v626_v0  ;;  %438 = vmatprep.subr.bf16.mxu1 %v626_v0 }
  0x76   :  { %419 = vmatpush3.bf16.msra.mxu0 %v464_v9  ;;  %439 = vmatpush3.bf16.msra.mxu1 %v473_v16 }
  0x77   :  { %420 = vmatprep.subr.bf16.mxu0 %v626_v0  ;;  %440 = vmatprep.subr.bf16.mxu1 %v626_v0 }
  0x7a   :  { %421 = vmatpush3.bf16.msra.mxu0 %v465_v10  ;;  %441 = vmatpush3.bf16.msra.mxu1 %v474_v17 }
  0x7d   :  { %423 = vmatmul.mubr.bf16.vlgmr.msra.gmra.mrb[0].mxu0 %v466_v11 }
 0x150   :  { %v205_v19 = vpop.f32.mrb[0].mxu0 }
 0x151   :  { %v206_v20 = vadd.f32 %v369_v18, %v205_v19  ;;  %v424_v21 = vpop.f32.mrb[1].mxu0 }
 0x152   :  { %v208_v22 = vpop.f32.mrb[2].mxu0 }
 0x153   :  { %v214_v23 = vmul.f32 0.70710677, %v206_v20  ;;  %v209_v24 = vadd.f32 %v369_v18, %v208_v22  ;;  %v425_v25 = vpop.f32.mrb[3].mxu0  ;;  %v212_v30 = vmul.f32 0.5, %v206_v20 }
 0x155   :  { %475 = verf.f32 %v214_v23  ;;  %v215_v26 = vmul.f32 0.70710677, %v209_v24  ;;  %v213_v31 = vmul.f32 0.5, %v209_v24 }
 0x157   :  { %477 = verf.f32 %v215_v26 }
 0x15f   :  { %v476_v27 = vpop.eup %475 }
 0x160   :  { %v218_v28 = vadd.f32 1.0, %v476_v27 }
 0x161   :  { %v478_v29 = vpop.eup %477 }
 0x162   :  { %v219_v32 = vadd.f32 1.0, %v478_v29  ;;  %v220_v33 = vmul.f32 %v218_v28, %v212_v30 }
 0x164   :  { %v221_v34 = vmul.f32 %v219_v32, %v213_v31 }
 0x166   :  { %v224_v35 = vpack.c.bf16 %v221_v34, %v220_v33 }
 0x168   :  { %443 = vmatmul.mubr.bf16.vlgmr.msra.gmra.mrb[0].mxu1 %v224_v35 }
 0x23b   :  { %v323_v37 = vpop.f32.mrb[0].mxu1 }
 0x23c   :  { %v346_v38 = vadd.f32 %v387_v36, %v323_v37  ;;  %v444_v39 = vpop.f32.mrb[1].mxu1 }
 0x23d   :  { %v326_v40 = vpop.f32.mrb[2].mxu1 }
 0x23e   :  { %348 = vst [vmem:[#allocation12] sm:$0xff] %v346_v38  ;;  %v347_v41 = vadd.f32 %v387_v36, %v326_v40  ;;  %v445_v42 = vpop.f32.mrb[3].mxu1 }
 0x240   :  { %349 = vst [vmem:[#allocation12 + $0x8] sm:$0xff] %v347_v41 }
 0x241   :  { %600 = shalt.err (!%p597_p2)
}
 0x242   :  { %s601_s7 = scalar_lea.hbm %s754_s5, 256 }
 0x243   :  { %p602_p3 = scmp.ne.s32.totalorder %s754_s5, %s601_s7  ;;  %p605_p4 = scmp.lt.u32.totalorder %s601_s7, %s754_s5 }
 0x245   :  { %p607_p5 = pnand %p605_p4, %p602_p3 }
 0x247   :  { %610 = shalt.err (!%p607_p5)
}
 0x248   :  { %s629_s12 = smov 128   ;;  %s630_s13 = smov 8  }
 0x249   :  { %361 = dma.vmem_to_hbm [thread:$0]  %s356_s28, 256, %s754_s5, [#allocation5], %s629_s12, %s629_s12, %s630_s13  }
 0x24a   :  { %617 = dma.done.wait [#allocation5], 256  }
 0x24b   :  { %618 = vsyncadd [#allocation5], 4294967040 }
 0x24c   :  { %365 = vsyncpa [#allocation4], 1 }
 0x24d   :  { %366 = vsyncpa [#allocation7], 1 }
 0x24e   :  { %367 = vsyncpa [#allocation10], 1 }
 0x24f   :  { %368 = vsyncpa [#allocation5], 1 }

</bundles_post_ra>
